<compile_context>
chip_gen: v7x
topology: tpu7x:2x2x1
jax: 0.10.0
libtpu: 0.0.40
codegen_flags: <defaults>
</compile_context>

<pallas_src>
from functools import lru_cache

import numpy as np
import jax
import jax.numpy as jnp
from jax import lax
from jax.experimental import pallas as pl
from jax.experimental.pallas import tpu as pltpu

# ----- FD_block hyperparameters (from __init__) -----
ALPHA = 2000.0        # constructor argument `alpha`
TAU = 0.0             # tau == 0  ->  dual ascent is a no-op (lambda stays 0)
K_MODES = 2
DC = 0
INIT = 1              # init == 1 -> omega_k = 0.5*k/K
TOL = 5e-5
MAX_N = 5
_EPS = float(np.finfo(np.float64).eps)

# Set to jnp.bfloat16 on v5e/v6e for full-rate MXU on the two dense DFT/reconstruction
# matmuls (accumulation stays f32 via preferred_element_type).  Kept float32 by default
# for closest numerics to the float64 reference given TOL=5e-5.
MATMUL_DTYPE = jnp.float32


# ---------------------------------------------------------------------------
# Host-side constants (vectorized + cached; milliseconds instead of O(T^2) iffts)
# ---------------------------------------------------------------------------
@lru_cache(maxsize=None)
def _build_constants(T):
    """D_cat [T, 2T]: mirror-folded positive-half shifted DFT (re | im columns).
       R_cat [2T, T]: Hermitian-symmetrized real-ifft restricted to the keep window
                      (re rows ; im rows)."""
    T2 = 2 * T

    # ---- forward: fh_pos[m] = sum_s sig[s] * D[s, m],  m = 0..T-1 (positive bins) ----
    mirror_map = np.concatenate([np.arange(T // 2 - 1, -1, -1),   # flip(first half)
                                 np.arange(T),                     # signal
                                 np.arange(T - 1, T // 2 - 1, -1)])  # flip(second half)
    tm = np.arange(T2)[:, None]
    m = np.arange(T)[None, :]
    W = np.exp(-2j * np.pi * tm * m / T2)                          # [T2, T]
    D = np.zeros((T, T), dtype=np.complex128)
    np.add.at(D, mirror_map, W)                                    # fold mirror into D
    D_cat = np.concatenate([D.real, D.imag], axis=1).astype(np.float32)   # [T, 2T]

    # ---- reconstruction (closed form of symmetrize + ifftshift + ifft + real + keep) --
    # U (unshifted full spectrum) as a linear map of (a, b) = (Re, Im) of positive bins:
    #   U[0]    = a[0]   - i b[0]
    #   U[m]    = a[m]   + i b[m]          m = 1..T-1
    #   U[T]    = a[T-1] - i b[T-1]
    #   U[T+m]  = a[T-m] - i b[T-m]        m = 1..T-1
    P = np.zeros((T, T2))
    Q = np.zeros((T, T2))
    P[0, 0] = 1.0
    Q[0, 0] = -1.0
    idx = np.arange(1, T)
    P[idx, idx] = 1.0
    Q[idx, idx] = 1.0
    P[T - 1, T] += 1.0
    Q[T - 1, T] += -1.0
    P[T - idx, T + idx] += 1.0
    Q[T - idx, T + idx] += -1.0

    k = np.arange(T2)[:, None]
    n = np.arange(T // 2, 3 * T // 2)[None, :]                     # de-mirror keep window
    ang = 2.0 * np.pi * k * n / T2
    Cc = np.cos(ang) / T2                                          # [T2, T]
    Cs = -np.sin(ang) / T2
    R_re = P @ Cc                                                  # [T, T]
    R_im = Q @ Cs                                                  # [T, T]
    R_cat = np.concatenate([R_re, R_im], axis=0).astype(np.float32)  # [2T, T]
    return D_cat, R_cat


def _vmem_limit(est_bytes):
    return int(min(64 << 20, max(32 << 20, 2 * est_bytes + (4 << 20))))


def _pick_tile(n, cap):
    t = cap
    while t >= 128:
        if n % t == 0:
            return t
        t //= 2
    return n


# ---------------------------------------------------------------------------
# Tiled matmul (MXU): grid = (N tiles "parallel", K tiles "arbitrary"), f32 accumulator
# ---------------------------------------------------------------------------
def _mm_kernel(a_ref, b_ref, o_ref, acc_ref):
    @pl.when(pl.program_id(1) == 0)
    def _():
        acc_ref[...] = jnp.zeros_like(acc_ref)

    acc_ref[...] += jnp.dot(a_ref[...], b_ref[...],
                            preferred_element_type=jnp.float32)

    @pl.when(pl.program_id(1) == pl.num_programs(1) - 1)
    def _():
        o_ref[...] = acc_ref[...].astype(o_ref.dtype)


def _tiled_matmul(a, b):
    M, K = a.shape
    Kb, N = b.shape
    assert K == Kb
    tn = _pick_tile(N, 512)
    tk = _pick_tile(K, 1024)
    isz = jnp.dtype(a.dtype).itemsize
    est = 2 * (M * tk + tk * tn) * isz + 3 * M * tn * 4
    return pl.pallas_call(
        _mm_kernel,
        out_shape=jax.ShapeDtypeStruct((M, N), jnp.float32),
        grid_spec=pltpu.PrefetchScalarGridSpec(
            num_scalar_prefetch=0,
            grid=(N // tn, K // tk),
            in_specs=[pl.BlockSpec((M, tk), lambda j, k: (0, k)),
                      pl.BlockSpec((tk, tn), lambda j, k: (k, j))],
            out_specs=pl.BlockSpec((M, tn), lambda j, k: (0, j)),
            scratch_shapes=[pltpu.VMEM((M, tn), jnp.float32)]),
        compiler_params=pltpu.CompilerParams(
            dimension_semantics=("parallel", "arbitrary"),
            vmem_limit_bytes=_vmem_limit(est)),
    )(a, b)


# ---------------------------------------------------------------------------
# ADMM kernel: MVMD iterations on the positive-half spectrum only ([C, T] state)
# ---------------------------------------------------------------------------
def _make_admm_kernel(C, T):
    T2 = 2 * T                       # mirrored length (normalization of uDiff)
    n_iters = MAX_N - 1              # reference: while (uDiff > tol && n < N), n starts at 1
    inv_T2 = 1.0 / T2

    def kernel(fh_re_ref, fh_im_ref, u_re_out_ref, u_im_out_ref):
        fh_re = fh_re_ref[...]                                    # [C, T]
        fh_im = fh_im_ref[...]
        # positive-half frequency grid: m / (2T), m = 0..T-1
        freqs = (lax.broadcasted_iota(jnp.int32, (1, T), 1)
                 .astype(jnp.float32) * inv_T2)                   # [1, T]

        zero = jnp.zeros((C, T), jnp.float32)
        carry0 = (
            tuple(zero for _ in range(K_MODES)),                  # u_re
            tuple(zero for _ in range(K_MODES)),                  # u_im
            zero, zero,                                           # sum_uk (re, im)
            tuple(jnp.asarray(0.5 * k / K_MODES, jnp.float32)     # omega (init == 1)
                  for k in range(K_MODES)),
            jnp.asarray(0, jnp.int32),                            # converged flag
        )

        def admm_step(carry):
            u_re_t, u_im_t, sum_re, sum_im, om_t, conv = carry
            u_re_old, u_im_old = list(u_re_t), list(u_im_t)
            u_re_new, u_im_new = list(u_re_t), list(u_im_t)
            om_new = list(om_t)
            s_re, s_im = sum_re, sum_im

            for k in range(K_MODES):          # K static -> Python unroll (Gauss-Seidel)
                if k == 0:
                    p_re, p_im = u_re_old[K_MODES - 1], u_im_old[K_MODES - 1]
                else:
                    p_re, p_im = u_re_new[k - 1], u_im_new[k - 1]
                s_re = p_re + s_re - u_re_old[k]
                s_im = p_im + s_im - u_im_old[k]
                df = freqs - om_t[k]
                inv_d = pl.reciprocal(1.0 + ALPHA * df * df, approx=True)   # EUP slot
                # tau == 0  ->  lambda is identically zero; dual-ascent terms removed.
                uk_re = (fh_re - s_re) * inv_d
                uk_im = (fh_im - s_im) * inv_d
                u_re_new[k], u_im_new[k] = uk_re, uk_im
                if (DC == 0) or (k > 0):                           # center-frequency update
                    power = uk_re * uk_re + uk_im * uk_im
                    om_new[k] = jnp.sum(freqs * power) / jnp.sum(power)

            udiff = jnp.asarray(_EPS, jnp.float32)
            for k in range(K_MODES):
                dre = u_re_new[k] - u_re_old[k]
                dim_ = u_im_new[k] - u_im_old[k]
                udiff = udiff + inv_T2 * jnp.sum(dre * dre + dim_ * dim_)
            conv_new = jnp.maximum(conv, (jnp.abs(udiff) <= TOL).astype(jnp.int32))

            return (tuple(u_re_new), tuple(u_im_new), s_re, s_im,
                    tuple(om_new), conv_new)

        def body(_, carry):
            # Skip the whole iteration once converged (reference while-loop semantics).
            return lax.cond(carry[-1] > 0, lambda c: c, admm_step, carry)

        u_re_t, u_im_t, *_ = lax.fori_loop(0, n_iters, body, carry0)

        u_re_out_ref[...] = u_re_t[0]         # mode 0 = trend (omega_0 starts at 0)
        u_im_out_ref[...] = u_im_t[0]

    return kernel


def _run_admm(fh_re, fh_im):
    C, T = fh_re.shape
    est = 4 * C * T * (4 * K_MODES + 12)
    vmem = pl.BlockSpec(memory_space=pltpu.MemorySpace.VMEM)
    return pl.pallas_call(
        _make_admm_kernel(C, T),
        out_shape=(jax.ShapeDtypeStruct((C, T), jnp.float32),
                   jax.ShapeDtypeStruct((C, T), jnp.float32)),
        in_specs=[vmem, vmem],
        out_specs=(vmem, vmem),
        compiler_params=pltpu.CompilerParams(vmem_limit_bytes=_vmem_limit(est)),
    )(fh_re, fh_im)


# ---------------------------------------------------------------------------
# FD_block.forward
# ---------------------------------------------------------------------------
@jax.jit
def fd_block_forward(x):
    """x:[B,C,L] -> (x_h, x_l), both [B,C,L]."""
    B, C, L = x.shape
    T = B * L
    # mvmd orientation (T > C -> channels x time) and even-length mirroring.
    assert T > C and T % 2 == 0, "requires B*L > C and B*L even"

    x = x.astype(jnp.float32)
    sig = jnp.transpose(x, (0, 2, 1)).reshape(T, C).T             # [C, T]

    D_cat_np, R_cat_np = _build_constants(T)
    D_cat = jnp.asarray(D_cat_np, dtype=MATMUL_DTYPE)             # [T, 2T]
    R_cat = jnp.asarray(R_cat_np, dtype=MATMUL_DTYPE)             # [2T, T]

    # 1) forward spectrum (positive half only, mirror folded in): [fh_re | fh_im]
    fh_cat = _tiled_matmul(sig.astype(MATMUL_DTYPE), D_cat)       # [C, 2T] f32
    fh_re, fh_im = fh_cat[:, :T], fh_cat[:, T:]

    # 2) MVMD ADMM iterations, keep mode 0
    u_re0, u_im0 = _run_admm(fh_re, fh_im)                        # [C, T] each
    ucat = jnp.concatenate([u_re0, u_im0], axis=1)                # [C, 2T]

    # 3) time-domain trend
    xl_ct = _tiled_matmul(ucat.astype(MATMUL_DTYPE), R_cat)       # [C, T] f32

    x_l = xl_ct.T.reshape(B, L, C).transpose(0, 2, 1)             # [B, C, L]
    x_h = x - x_l
    return x_h, x_l


if __name__ == "__main__":
    key = jax.random.PRNGKey(0)
    B, C, L = 2, 4, 8                                             # x: [batch, channels, length]
    x = jax.random.normal(key, (B, C, L), dtype=jnp.float32)

    x_h, x_l = fd_block_forward(x)
    jax.block_until_ready((x_h, x_l))

    assert x_h.shape == (B, C, L) and x_l.shape == (B, C, L)
    assert bool(jnp.all(jnp.isfinite(x_h))) and bool(jnp.all(jnp.isfinite(x_l)))
    # decomposition identity x = x_h + x_l holds by construction
    assert bool(jnp.allclose(x_h + x_l, x, atol=1e-5))
    print("KERNEL_OK")
</pallas_src>

<mosaic_0001>
module attributes {stable_mosaic.version = 11 : i64} {
  func.func @_mm_kernel(%arg0: i32, %arg1: i32, %arg2: memref<4x16xf32, #tpu.memory_space<vmem>>, %arg3: memref<16x32xf32, #tpu.memory_space<vmem>>, %arg4: memref<4x32xf32, #tpu.memory_space<vmem>>, %arg5: memref<4x32xf32, #tpu.memory_space<vmem>>) attributes {dimension_semantics = [#tpu.dimension_semantics<parallel>, #tpu.dimension_semantics<arbitrary>], iteration_bounds = array<i64: 1, 1>, scalar_prefetch = 0 : i64, scratch_operands = 1 : i64, tpu.core_type = #tpu.core_type<tc>, window_params = [{transform_indices = @transform_0, window_bounds = array<i64: 4, 16>}, {transform_indices = @transform_1, window_bounds = array<i64: 16, 32>}, {transform_indices = @transform_2, window_bounds = array<i64: 4, 32>}]} {
    %c0_i32 = arith.constant 0 : i32
    %0 = arith.cmpi eq, %arg1, %c0_i32 : i32
    %1 = arith.extui %0 : i1 to i32
    %c0_i32_0 = arith.constant 0 : i32
    %2 = arith.cmpi ne, %1, %c0_i32_0 : i32
    scf.if %2 {
      %cst_10 = arith.constant 0.000000e+00 : f32
      %12 = vector.broadcast %cst_10 : f32 to vector<4x32xf32>
      %c0_11 = arith.constant 0 : index
      %c0_12 = arith.constant 0 : index
      %13 = vector.load %arg5[%c0_11, %c0_12] : memref<4x32xf32, #tpu.memory_space<vmem>>, vector<4x32xf32>
      tpu.vector_store %arg5[%c0_11, %c0_12], %12 {strides = array<i32>} : memref<4x32xf32, #tpu.memory_space<vmem>>, vector<4x32xf32>,
    } else {
    }
    %c0 = arith.constant 0 : index
    %c0_1 = arith.constant 0 : index
    %3 = vector.load %arg5[%c0, %c0_1] : memref<4x32xf32, #tpu.memory_space<vmem>>, vector<4x32xf32>
    %c0_2 = arith.constant 0 : index
    %c0_3 = arith.constant 0 : index
    %4 = vector.load %arg2[%c0_2, %c0_3] : memref<4x16xf32, #tpu.memory_space<vmem>>, vector<4x16xf32>
    %c0_4 = arith.constant 0 : index
    %c0_5 = arith.constant 0 : index
    %5 = vector.load %arg3[%c0_4, %c0_5] : memref<16x32xf32, #tpu.memory_space<vmem>>, vector<16x32xf32>
    %cst = arith.constant dense<0.000000e+00> : vector<4x32xf32>
    %6 = tpu.matmul %4, %5, %cst {dimension_numbers = #tpu.dot_dimension_numbers<[1], [0], [0], [1], [0, 0, 1, 1], [], []>} : vector<4x16xf32>, vector<16x32xf32>, vector<4x32xf32> -> vector<4x32xf32>
    %7 = arith.addf %3, %6 : vector<4x32xf32>
    %c0_6 = arith.constant 0 : index
    %c0_7 = arith.constant 0 : index
    %8 = vector.load %arg5[%c0_6, %c0_7] : memref<4x32xf32, #tpu.memory_space<vmem>>, vector<4x32xf32>
    tpu.vector_store %arg5[%c0_6, %c0_7], %7 {strides = array<i32>} : memref<4x32xf32, #tpu.memory_space<vmem>>, vector<4x32xf32>,
    %c0_i32_8 = arith.constant 0 : i32
    %9 = arith.cmpi eq, %arg1, %c0_i32_8 : i32
    %10 = arith.extui %9 : i1 to i32
    %c0_i32_9 = arith.constant 0 : i32
    %11 = arith.cmpi ne, %10, %c0_i32_9 : i32
    scf.if %11 {
      %c0_10 = arith.constant 0 : index
      %c0_11 = arith.constant 0 : index
      %12 = vector.load %arg5[%c0_10, %c0_11] : memref<4x32xf32, #tpu.memory_space<vmem>>, vector<4x32xf32>
      %c0_12 = arith.constant 0 : index
      %c0_13 = arith.constant 0 : index
      %13 = vector.load %arg4[%c0_12, %c0_13] : memref<4x32xf32, #tpu.memory_space<vmem>>, vector<4x32xf32>
      tpu.vector_store %arg4[%c0_12, %c0_13], %12 {strides = array<i32>} : memref<4x32xf32, #tpu.memory_space<vmem>>, vector<4x32xf32>,
    } else {
    }
    return
  }
  func.func @transform_0(%arg0: i32, %arg1: i32) -> (i32, i32) {
    %c0_i32 = arith.constant 0 : i32
    %c0_i32_0 = arith.constant 0 : i32
    return %c0_i32, %arg1 : i32, i32
  }
  func.func @transform_1(%arg0: i32, %arg1: i32) -> (i32, i32) {
    %c0_i32 = arith.constant 0 : i32
    return %arg1, %arg0 : i32, i32
  }
  func.func @transform_2(%arg0: i32, %arg1: i32) -> (i32, i32) {
    %c0_i32 = arith.constant 0 : i32
    %c0_i32_0 = arith.constant 0 : i32
    return %c0_i32, %arg0 : i32, i32
  }
}

module attributes {stable_mosaic.version = 11 : i64} {
  func.func @_mm_kernel(%arg0: i32, %arg1: i32, %arg2: memref<4x32xf32, #tpu.memory_space<vmem>>, %arg3: memref<32x16xf32, #tpu.memory_space<vmem>>, %arg4: memref<4x16xf32, #tpu.memory_space<vmem>>, %arg5: memref<4x16xf32, #tpu.memory_space<vmem>>) attributes {dimension_semantics = [#tpu.dimension_semantics<parallel>, #tpu.dimension_semantics<arbitrary>], iteration_bounds = array<i64: 1, 1>, scalar_prefetch = 0 : i64, scratch_operands = 1 : i64, tpu.core_type = #tpu.core_type<tc>, window_params = [{transform_indices = @transform_0, window_bounds = array<i64: 4, 32>}, {transform_indices = @transform_1, window_bounds = array<i64: 32, 16>}, {transform_indices = @transform_2, window_bounds = array<i64: 4, 16>}]} {
    %c0_i32 = arith.constant 0 : i32
    %0 = arith.cmpi eq, %arg1, %c0_i32 : i32
    %1 = arith.extui %0 : i1 to i32
    %c0_i32_0 = arith.constant 0 : i32
    %2 = arith.cmpi ne, %1, %c0_i32_0 : i32
    scf.if %2 {
      %cst_10 = arith.constant 0.000000e+00 : f32
      %12 = vector.broadcast %cst_10 : f32 to vector<4x16xf32>
      %c0_11 = arith.constant 0 : index
      %c0_12 = arith.constant 0 : index
      %13 = vector.load %arg5[%c0_11, %c0_12] : memref<4x16xf32, #tpu.memory_space<vmem>>, vector<4x16xf32>
      tpu.vector_store %arg5[%c0_11, %c0_12], %12 {strides = array<i32>} : memref<4x16xf32, #tpu.memory_space<vmem>>, vector<4x16xf32>,
    } else {
    }
    %c0 = arith.constant 0 : index
    %c0_1 = arith.constant 0 : index
    %3 = vector.load %arg5[%c0, %c0_1] : memref<4x16xf32, #tpu.memory_space<vmem>>, vector<4x16xf32>
    %c0_2 = arith.constant 0 : index
    %c0_3 = arith.constant 0 : index
    %4 = vector.load %arg2[%c0_2, %c0_3] : memref<4x32xf32, #tpu.memory_space<vmem>>, vector<4x32xf32>
    %c0_4 = arith.constant 0 : index
    %c0_5 = arith.constant 0 : index
    %5 = vector.load %arg3[%c0_4, %c0_5] : memref<32x16xf32, #tpu.memory_space<vmem>>, vector<32x16xf32>
    %cst = arith.constant dense<0.000000e+00> : vector<4x16xf32>
    %6 = tpu.matmul %4, %5, %cst {dimension_numbers = #tpu.dot_dimension_numbers<[1], [0], [0], [1], [0, 0, 1, 1], [], []>} : vector<4x32xf32>, vector<32x16xf32>, vector<4x16xf32> -> vector<4x16xf32>
    %7 = arith.addf %3, %6 : vector<4x16xf32>
    %c0_6 = arith.constant 0 : index
    %c0_7 = arith.constant 0 : index
    %8 = vector.load %arg5[%c0_6, %c0_7] : memref<4x16xf32, #tpu.memory_space<vmem>>, vector<4x16xf32>
    tpu.vector_store %arg5[%c0_6, %c0_7], %7 {strides = array<i32>} : memref<4x16xf32, #tpu.memory_space<vmem>>, vector<4x16xf32>,
    %c0_i32_8 = arith.constant 0 : i32
    %9 = arith.cmpi eq, %arg1, %c0_i32_8 : i32
    %10 = arith.extui %9 : i1 to i32
    %c0_i32_9 = arith.constant 0 : i32
    %11 = arith.cmpi ne, %10, %c0_i32_9 : i32
    scf.if %11 {
      %c0_10 = arith.constant 0 : index
      %c0_11 = arith.constant 0 : index
      %12 = vector.load %arg5[%c0_10, %c0_11] : memref<4x16xf32, #tpu.memory_space<vmem>>, vector<4x16xf32>
      %c0_12 = arith.constant 0 : index
      %c0_13 = arith.constant 0 : index
      %13 = vector.load %arg4[%c0_12, %c0_13] : memref<4x16xf32, #tpu.memory_space<vmem>>, vector<4x16xf32>
      tpu.vector_store %arg4[%c0_12, %c0_13], %12 {strides = array<i32>} : memref<4x16xf32, #tpu.memory_space<vmem>>, vector<4x16xf32>,
    } else {
    }
    return
  }
  func.func @transform_0(%arg0: i32, %arg1: i32) -> (i32, i32) {
    %c0_i32 = arith.constant 0 : i32
    %c0_i32_0 = arith.constant 0 : i32
    return %c0_i32, %arg1 : i32, i32
  }
  func.func @transform_1(%arg0: i32, %arg1: i32) -> (i32, i32) {
    %c0_i32 = arith.constant 0 : i32
    return %arg1, %arg0 : i32, i32
  }
  func.func @transform_2(%arg0: i32, %arg1: i32) -> (i32, i32) {
    %c0_i32 = arith.constant 0 : i32
    %c0_i32_0 = arith.constant 0 : i32
    return %c0_i32, %arg0 : i32, i32
  }
}

module attributes {stable_mosaic.version = 11 : i64} {
  func.func @kernel(%arg0: memref<4x16xf32, #tpu.memory_space<vmem>>, %arg1: memref<4x16xf32, #tpu.memory_space<vmem>>, %arg2: memref<4x16xf32, #tpu.memory_space<vmem>>, %arg3: memref<4x16xf32, #tpu.memory_space<vmem>>) attributes {dimension_semantics = [], scalar_prefetch = 0 : i64, scratch_operands = 0 : i64, tpu.core_type = #tpu.core_type<tc>} {
    %c0 = arith.constant 0 : index
    %c0_0 = arith.constant 0 : index
    %0 = vector.load %arg0[%c0, %c0_0] : memref<4x16xf32, #tpu.memory_space<vmem>>, vector<4x16xf32>
    %c0_1 = arith.constant 0 : index
    %c0_2 = arith.constant 0 : index
    %1 = vector.load %arg1[%c0_1, %c0_2] : memref<4x16xf32, #tpu.memory_space<vmem>>, vector<4x16xf32>
    %2 = tpu.iota {dimensions = array<i32: 1>} : vector<1x16xi32>
    %3 = arith.sitofp %2 : vector<1x16xi32> to vector<1x16xf32>
    %cst = arith.constant 3.125000e-02 : f32
    %4 = vector.broadcast %cst : f32 to vector<1x16xf32>
    %5 = arith.mulf %3, %4 : vector<1x16xf32>
    %cst_3 = arith.constant 0.000000e+00 : f32
    %6 = vector.broadcast %cst_3 : f32 to vector<4x16xf32>
    %cst_4 = arith.constant 0.000000e+00 : f32
    %cst_5 = arith.constant 2.500000e-01 : f32
    %c0_i32 = arith.constant 0 : i32
    %c0_i32_6 = arith.constant 0 : i32
    %c4_i32 = arith.constant 4 : i32
    %7 = arith.addi %c0_i32_6, %c4_i32 : i32
    %c1_i32 = arith.constant 1 : i32
    %8:9 = scf.for %arg4 = %c0_i32_6 to %7 step %c1_i32 iter_args(%arg5 = %6, %arg6 = %6, %arg7 = %6, %arg8 = %6, %arg9 = %6, %arg10 = %6, %arg11 = %cst_4, %arg12 = %cst_5, %arg13 = %c0_i32) -> (vector<4x16xf32>, vector<4x16xf32>, vector<4x16xf32>, vector<4x16xf32>, vector<4x16xf32>, vector<4x16xf32>, f32, f32, i32)  : i32 {
      %c0_i32_11 = arith.constant 0 : i32
      %11 = arith.cmpi sgt, %arg13, %c0_i32_11 : i32
      %12 = arith.extui %11 : i1 to i32
      %c0_i32_12 = arith.constant 0 : i32
      %13 = arith.cmpi ne, %12, %c0_i32_12 : i32
      %14:9 = scf.if %13 -> (vector<4x16xf32>, vector<4x16xf32>, vector<4x16xf32>, vector<4x16xf32>, vector<4x16xf32>, vector<4x16xf32>, f32, f32, i32) {
        scf.yield %arg5, %arg6, %arg7, %arg8, %arg9, %arg10, %arg11, %arg12, %arg13 : vector<4x16xf32>, vector<4x16xf32>, vector<4x16xf32>, vector<4x16xf32>, vector<4x16xf32>, vector<4x16xf32>, f32, f32, i32
      } else {
        %15 = arith.addf %arg6, %arg9 : vector<4x16xf32>
        %16 = arith.subf %15, %arg5 : vector<4x16xf32>
        %17 = arith.addf %arg8, %arg10 : vector<4x16xf32>
        %18 = arith.subf %17, %arg7 : vector<4x16xf32>
        %19 = vector.broadcast %arg11 : f32 to vector<1x16xf32>
        %20 = arith.subf %5, %19 : vector<1x16xf32>
        %cst_13 = arith.constant 2.000000e+03 : f32
        %21 = vector.broadcast %cst_13 : f32 to vector<1x16xf32>
        %22 = arith.mulf %21, %20 : vector<1x16xf32>
        %23 = arith.mulf %22, %20 : vector<1x16xf32>
        %cst_14 = arith.constant 1.000000e+00 : f32
        %24 = vector.broadcast %cst_14 : f32 to vector<1x16xf32>
        %25 = arith.addf %24, %23 : vector<1x16xf32>
        %26 = tpu.reciprocal %25 {approx = true} : vector<1x16xf32> -> vector<1x16xf32>
        %27 = arith.subf %0, %16 : vector<4x16xf32>
        %28 = vector.broadcast %26 : vector<1x16xf32> to vector<4x16xf32>
        %29 = arith.mulf %27, %28 : vector<4x16xf32>
        %30 = arith.subf %1, %18 : vector<4x16xf32>
        %31 = vector.broadcast %26 : vector<1x16xf32> to vector<4x16xf32>
        %32 = arith.mulf %30, %31 : vector<4x16xf32>
        %33 = arith.mulf %29, %29 : vector<4x16xf32>
        %34 = arith.mulf %32, %32 : vector<4x16xf32>
        %35 = arith.addf %33, %34 : vector<4x16xf32>
        %36 = vector.broadcast %5 : vector<1x16xf32> to vector<4x16xf32>
        %37 = arith.mulf %36, %35 : vector<4x16xf32>
        %38 = vector.shape_cast %37 : vector<4x16xf32> to vector<1x4x16xf32>
        %cst_15 = arith.constant dense<0.000000e+00> : vector<1xf32>
        %39 = vector.multi_reduction <add>, %38, %cst_15 [1, 2] : vector<1x4x16xf32> to vector<1xf32>
        %40 = vector.shape_cast %39 : vector<1xf32> to vector<1x1x1xf32>
        %41 = vector.extract %40[0, 0, 0] : f32 from vector<1x1x1xf32>
        %42 = vector.shape_cast %35 : vector<4x16xf32> to vector<1x4x16xf32>
        %cst_16 = arith.constant dense<0.000000e+00> : vector<1xf32>
        %43 = vector.multi_reduction <add>, %42, %cst_16 [1, 2] : vector<1x4x16xf32> to vector<1xf32>
        %44 = vector.shape_cast %43 : vector<1xf32> to vector<1x1x1xf32>
        %45 = vector.extract %44[0, 0, 0] : f32 from vector<1x1x1xf32>
        %46 = arith.divf %41, %45 : f32
        %47 = arith.addf %29, %16 : vector<4x16xf32>
        %48 = arith.subf %47, %arg6 : vector<4x16xf32>
        %49 = arith.addf %32, %18 : vector<4x16xf32>
        %50 = arith.subf %49, %arg8 : vector<4x16xf32>
        %51 = vector.broadcast %arg12 : f32 to vector<1x16xf32>
        %52 = arith.subf %5, %51 : vector<1x16xf32>
        %cst_17 = arith.constant 2.000000e+03 : f32
        %53 = vector.broadcast %cst_17 : f32 to vector<1x16xf32>
        %54 = arith.mulf %53, %52 : vector<1x16xf32>
        %55 = arith.mulf %54, %52 : vector<1x16xf32>
        %cst_18 = arith.constant 1.000000e+00 : f32
        %56 = vector.broadcast %cst_18 : f32 to vector<1x16xf32>
        %57 = arith.addf %56, %55 : vector<1x16xf32>
        %58 = tpu.reciprocal %57 {approx = true} : vector<1x16xf32> -> vector<1x16xf32>
        %59 = arith.subf %0, %48 : vector<4x16xf32>
        %60 = vector.broadcast %58 : vector<1x16xf32> to vector<4x16xf32>
        %61 = arith.mulf %59, %60 : vector<4x16xf32>
        %62 = arith.subf %1, %50 : vector<4x16xf32>
        %63 = vector.broadcast %58 : vector<1x16xf32> to vector<4x16xf32>
        %64 = arith.mulf %62, %63 : vector<4x16xf32>
        %65 = arith.mulf %61, %61 : vector<4x16xf32>
        %66 = arith.mulf %64, %64 : vector<4x16xf32>
        %67 = arith.addf %65, %66 : vector<4x16xf32>
        %68 = vector.broadcast %5 : vector<1x16xf32> to vector<4x16xf32>
        %69 = arith.mulf %68, %67 : vector<4x16xf32>
        %70 = vector.shape_cast %69 : vector<4x16xf32> to vector<1x4x16xf32>
        %cst_19 = arith.constant dense<0.000000e+00> : vector<1xf32>
        %71 = vector.multi_reduction <add>, %70, %cst_19 [1, 2] : vector<1x4x16xf32> to vector<1xf32>
        %72 = vector.shape_cast %71 : vector<1xf32> to vector<1x1x1xf32>
        %73 = vector.extract %72[0, 0, 0] : f32 from vector<1x1x1xf32>
        %74 = vector.shape_cast %67 : vector<4x16xf32> to vector<1x4x16xf32>
        %cst_20 = arith.constant dense<0.000000e+00> : vector<1xf32>
        %75 = vector.multi_reduction <add>, %74, %cst_20 [1, 2] : vector<1x4x16xf32> to vector<1xf32>
        %76 = vector.shape_cast %75 : vector<1xf32> to vector<1x1x1xf32>
        %77 = vector.extract %76[0, 0, 0] : f32 from vector<1x1x1xf32>
        %78 = arith.divf %73, %77 : f32
        %79 = arith.subf %29, %arg5 : vector<4x16xf32>
        %80 = arith.subf %32, %arg7 : vector<4x16xf32>
        %81 = arith.mulf %79, %79 : vector<4x16xf32>
        %82 = arith.mulf %80, %80 : vector<4x16xf32>
        %83 = arith.addf %81, %82 : vector<4x16xf32>
        %84 = vector.shape_cast %83 : vector<4x16xf32> to vector<1x4x16xf32>
        %cst_21 = arith.constant dense<0.000000e+00> : vector<1xf32>
        %85 = vector.multi_reduction <add>, %84, %cst_21 [1, 2] : vector<1x4x16xf32> to vector<1xf32>
        %86 = vector.shape_cast %85 : vector<1xf32> to vector<1x1x1xf32>
        %87 = vector.extract %86[0, 0, 0] : f32 from vector<1x1x1xf32>
        %cst_22 = arith.constant 3.125000e-02 : f32
        %88 = arith.mulf %cst_22, %87 : f32
        %cst_23 = arith.constant 2.22044605E-16 : f32
        %89 = arith.addf %cst_23, %88 : f32
        %90 = arith.subf %61, %arg6 : vector<4x16xf32>
        %91 = arith.subf %64, %arg8 : vector<4x16xf32>
        %92 = arith.mulf %90, %90 : vector<4x16xf32>
        %93 = arith.mulf %91, %91 : vector<4x16xf32>
        %94 = arith.addf %92, %93 : vector<4x16xf32>
        %95 = vector.shape_cast %94 : vector<4x16xf32> to vector<1x4x16xf32>
        %cst_24 = arith.constant dense<0.000000e+00> : vector<1xf32>
        %96 = vector.multi_reduction <add>, %95, %cst_24 [1, 2] : vector<1x4x16xf32> to vector<1xf32>
        %97 = vector.shape_cast %96 : vector<1xf32> to vector<1x1x1xf32>
        %98 = vector.extract %97[0, 0, 0] : f32 from vector<1x1x1xf32>
        %cst_25 = arith.constant 3.125000e-02 : f32
        %99 = arith.mulf %cst_25, %98 : f32
        %100 = arith.addf %89, %99 : f32
        %101 = math.absf %100 : f32
        %cst_26 = arith.constant 5.000000e-05 : f32
        %102 = arith.cmpf ole, %101, %cst_26 : f32
        %103 = arith.extui %102 : i1 to i32
        %104 = arith.maxsi %arg13, %103 : i32
        scf.yield %29, %61, %32, %64, %48, %50, %46, %78, %104 : vector<4x16xf32>, vector<4x16xf32>, vector<4x16xf32>, vector<4x16xf32>, vector<4x16xf32>, vector<4x16xf32>, f32, f32, i32
      }
      scf.yield %14#0, %14#1, %14#2, %14#3, %14#4, %14#5, %14#6, %14#7, %14#8 : vector<4x16xf32>, vector<4x16xf32>, vector<4x16xf32>, vector<4x16xf32>, vector<4x16xf32>, vector<4x16xf32>, f32, f32, i32
    }
    %c0_7 = arith.constant 0 : index
    %c0_8 = arith.constant 0 : index
    %9 = vector.load %arg2[%c0_7, %c0_8] : memref<4x16xf32, #tpu.memory_space<vmem>>, vector<4x16xf32>
    tpu.vector_store %arg2[%c0_7, %c0_8], %8#0 {strides = array<i32>} : memref<4x16xf32, #tpu.memory_space<vmem>>, vector<4x16xf32>,
    %c0_9 = arith.constant 0 : index
    %c0_10 = arith.constant 0 : index
    %10 = vector.load %arg3[%c0_9, %c0_10] : memref<4x16xf32, #tpu.memory_space<vmem>>, vector<4x16xf32>
    tpu.vector_store %arg3[%c0_9, %c0_10], %8#2 {strides = array<i32>} : memref<4x16xf32, #tpu.memory_space<vmem>>, vector<4x16xf32>,
    return
  }
}

</mosaic_0001>

<bundles_post_ra>
// kernel: fd_block_forward.3
= control target key start
LH: loop header
LB: loop body
LE: loop exit
PB: predicated region body
PF: predicated region fallthrough
CT: control target
= control target key end

     0   :  { %vm15_vm0 = vcmask 257024   ;;  %v124_v0 = vmov 0.0|0.0   ;;  %v125_v3 = vmov 0.0   ;;  %vm126_vm1 = vmmov 0   ;;  %s157_s1 = inlined_call_operand.vmem [shape: f32[16,32], index: 1, kind: input, shape index: {}]   ;;  %s158_s0 = inlined_call_operand.vmem [shape: f32[4,16], index: 0, kind: input, shape index: {}]   ;;  %s159_s2 = inlined_call_operand.vmem [shape: f32[4,32], index: 2, kind: output, shape index: {}]  }
   0x1   :  { %118 = vmatprep.subr.bf16.mxu0 %v124_v0  ;;  %v19_v1 = vld [vmem:[%s157_s1] sm:$0xff]  ;;  %v20_v2 = vld [vmem:[%s157_s1 + $0x8] sm:$0xff]  ;;  %16 = vst.msk [vmem:[#allocation2] sm:$0xf] %vm15_vm0, %v125_v3  ;;  %115 = vmatprep.mubr.msk.f32.mxu0 %vm126_vm1, %v125_v3  ;;  %vm21_vm2 = vcmask 130048  }
   0x2   :  { %v119_v4 = vpack.c.bf16 %v20_v2, %v19_v1  ;;  %v18_v5 = vld [vmem:[%s158_s0] sm:$0xf] }
   0x4   :  { %120 = vmatpush3.bf16.msra.mxu0 %v119_v4 }
   0x7   :  { %116 = vmatmul.mubr.msk.f32.vlgmr.msra.gmra.mrb[0].mxu0 %vm21_vm2, %v18_v5 }
   0x8   :  { %v17_v6 = vld [vmem:[#allocation2] sm:$0xf] }
  0xda   :  { %v91_v7 = vpop.f32.mrb[0].mxu0 }
  0xdb   :  { %v95_v8 = vadd.f32 %v91_v7, %v17_v6  ;;  %v117_v9 = vpop.f32.mrb[1].mxu0 }
  0xdd   :  { %97 = vst.msk [vmem:[#allocation2] sm:$0xf] %vm15_vm0, %v95_v8 }
  0xe4   :  { %v101_v10 = vld [vmem:[#allocation2] sm:$0xf] }
  0xe5   :  { %102 = vst.msk [vmem:[%s159_s2] sm:$0xf] %vm15_vm0, %v101_v10 }

// kernel: fd_block_forward.5
= control target key start
LH: loop header
LB: loop body
LE: loop exit
PB: predicated region body
PF: predicated region fallthrough
CT: control target
= control target key end

     0   :  { %vm15_vm0 = vcmask 125952   ;;  %v135_v0 = vmov 0.0|0.0   ;;  %v136_v4 = vmov 0.0   ;;  %vm137_vm1 = vmmov 0   ;;  %s174_s1 = inlined_call_operand.vmem [shape: f32[32,16], index: 1, kind: input, shape index: {}]   ;;  %s175_s0 = inlined_call_operand.vmem [shape: f32[4,32], index: 0, kind: input, shape index: {}]   ;;  %s176_s2 = inlined_call_operand.vmem [shape: f32[4,16], index: 2, kind: output, shape index: {}]  }
   0x1   :  { %126 = vmatprep.subr.bf16.mxu0 %v135_v0  ;;  %v19_v1 = vld [vmem:[%s174_s1] sm:$0xff]  ;;  %v20_v2 = vld [vmem:[%s174_s1 + $0x8] sm:$0xff]  ;;  %v21_v3 = vld [vmem:[%s174_s1 + $0x10] sm:$0xff]  ;;  %16 = vst.msk [vmem:[#allocation2] sm:$0xf] %vm15_vm0, %v136_v4  ;;  %123 = vmatprep.mubr.msk.f32.mxu0 %vm137_vm1, %v136_v4  ;;  %vm23_vm2 = vcmask 261120  }
   0x2   :  { %v127_v5 = vpack.c.bf16 %v20_v2, %v19_v1  ;;  %v22_v6 = vld [vmem:[%s174_s1 + $0x18] sm:$0xff]  ;;  %v18_v8 = vld [vmem:[%s175_s0] sm:$0xf] }
   0x3   :  { %v130_v7 = vpack.c.bf16 %v22_v6, %v21_v3 }
   0x4   :  { %128 = vmatpush3.bf16.msra.mxu0 %v127_v5 }
   0x5   :  { %129 = vmatprep.subr.bf16.mxu0 %v135_v0 }
   0x8   :  { %131 = vmatpush3.bf16.msra.mxu0 %v130_v7  ;;  %v17_v9 = vld [vmem:[#allocation2] sm:$0xf] }
   0xb   :  { %124 = vmatmul.mubr.msk.f32.vlgmr.msra.gmra.mrb[0].mxu0 %vm23_vm2, %v18_v8 }
  0xde   :  { %v93_v10 = vpop.f32.mrb[0].mxu0 }
  0xdf   :  { %v97_v11 = vadd.f32 %v93_v10, %v17_v9  ;;  %v125_v12 = vpop.f32.mrb[1].mxu0 }
  0xe1   :  { %99 = vst.msk [vmem:[#allocation2] sm:$0xf] %vm15_vm0, %v97_v11 }
  0xe8   :  { %v103_v13 = vld [vmem:[#allocation2] sm:$0xf] }
  0xe9   :  { %104 = vst.msk [vmem:[%s176_s2] sm:$0xf] %vm15_vm0, %v103_v13 }

// kernel: fd_block_forward.4
= control target key start
LH: loop header
LB: loop body
LE: loop exit
PB: predicated region body
PF: predicated region fallthrough
CT: control target
= control target key end

     0   :  { %v15_v0 = vlaneseq  ;;  %s577_s16 = smov 0   ;;  %s579_s17 = smov 0.25   ;;  %v583_v6 = vmov 0.0   ;;  %v585_v7 = vmov 0.0   ;;  %v587_v8 = vmov 0.0   ;;  %s747_s0 = inlined_call_operand.vmem [shape: f32[4,16], index: 0, kind: input, shape index: {}]   ;;  %s748_s1 = inlined_call_operand.vmem [shape: f32[4,16], index: 1, kind: input, shape index: {}]   ;;  %s749_s2 = inlined_call_operand.vmem [shape: f32[4,16], index: 2, kind: output, shape index: {0}]   ;;  %s750_s3 = inlined_call_operand.vmem [shape: f32[4,16], index: 3, kind: output, shape index: {1}]  }
   0x1   :  { %v568_v1 = vld [vmem:[%s747_s0] sm:$0xf]  ;;  %s581_s18 = smov 0.0   ;;  %v589_v9 = vmov 0.0   ;;  %v591_v10 = vmov 0.0   ;;  %v593_v11 = vmov 0.0  }
   0x2   :  { %v573_v2 = vld [vmem:[%s748_s1] sm:$0xf]  ;;  %v16_v3 = vand.u32 127, %v15_v0  ;;  %s595_s0 = smov 0  }
   0x4   :  { %v17_v4 = vcvt.s32.f32 %v16_v3 }
   0x6   :  { %v575_v5 = vmul.f32 0.03125, %v17_v4 }
   0x7 LB: > { %p34_p0 = scmp.gt.s32.totalorder %s471_s16, 0  ;;  %s751_s1 = smov %s471_s16  ;;  %v754_v12 = vmov %v483_v6  ;;  %v755_v13 = vmov %v487_v7  ;;  %v756_v14 = vmov %v491_v8  ;;  %v757_v15 = vmov %v495_v9  ;;  %s507_s0 = sphi %s595_s0, %s24_s0   ;;  %v503_v11 = vphi %v593_v11, %v770_v11   ;;  %v499_v10 = vphi %v591_v10, %v769_v10   ;;  %v495_v9 = vphi %v589_v9, %v768_v9   ;;  %v491_v8 = vphi %v587_v8, %v767_v8   ;;  %v487_v7 = vphi %v585_v7, %v766_v7   ;;  %v483_v6 = vphi %v583_v6, %v765_v6   ;;  %s479_s18 = sphi %s581_s18, %s764_s18   ;;  %s475_s17 = sphi %s579_s17, %s763_s17   ;;  %s471_s16 = sphi %s577_s16, %s762_s16  }
   0x8   : > { %s752_s19 = smov %s475_s17  ;;  %s753_s20 = smov %s479_s18  ;;  %v758_v16 = vmov %v499_v10  ;;  %v759_v17 = vmov %v503_v11  ;;  %v45_v18 = vstv (!%p34_p0), %s479_s18  ;;  %v88_v20 = vstv (!%p34_p0), %s475_s17 }
   0x9   : > { %40 = sbr.rel (%p34_p0) target bundleno = 387 (0x183), region = 24  ;;  %v46_v19 = vsub.f32 (!%p34_p0), %v575_v5, %v45_v18  ;;  %v89_v21 = vsub.f32 (!%p34_p0), %v575_v5, %v88_v20  ;;  %v41_v26 = vadd.f32 (!%p34_p0), %v487_v7, %v499_v10  ;;  %v43_v27 = vadd.f32 (!%p34_p0), %v483_v6, %v491_v8 }
   0xa   : > { %vm59_vm0 = vcmask (!%p34_p0), 125952  }
   0xb   : > { %v47_v22 = vmul.f32 (!%p34_p0), 2000.0, %v46_v19  ;;  %v90_v23 = vmul.f32 (!%p34_p0), 2000.0, %v89_v21  ;;  %v42_v29 = vsub.f32 (!%p34_p0), %v41_v26, %v503_v11  ;;  %v44_v30 = vsub.f32 (!%p34_p0), %v43_v27, %v495_v9 }
   0xd   : > { %v48_v24 = vmul.f32 (!%p34_p0), %v47_v22, %v46_v19  ;;  %v91_v28 = vmul.f32 (!%p34_p0), %v90_v23, %v89_v21  ;;  %v51_v32 = vsub.f32 (!%p34_p0), %v568_v1, %v42_v29  ;;  %v53_v33 = vsub.f32 (!%p34_p0), %v573_v2, %v44_v30 }
   0xf   : > { %v49_v25 = vadd.f32 (!%p34_p0), 1.0, %v48_v24  ;;  %v92_v31 = vadd.f32 (!%p34_p0), 1.0, %v91_v28 }
  0x11   : > { %385 = vrcp.f32 %v49_v25 }
  0x12   : > { %387 = vrcp.f32 %v92_v31 }
  0x1b   : > { %v386_v34 = vpop.eup %385 }
  0x1c   : > { %v635_v17 = vmul.f32 %v386_v34, %v51_v32   ;;  %v637_v15 = vmul.f32 %v386_v34, %v53_v33   ;;  %v388_v42 = vpop.eup %387 }
  0x1e   : > { %v55_v35 = vmul.f32 %v635_v17, %v635_v17  ;;  %v56_v36 = vmul.f32 %v637_v15, %v637_v15  ;;  %v84_v37 = vadd.f32 %v635_v17, %v42_v29  ;;  %v86_v38 = vadd.f32 %v637_v15, %v44_v30 }
  0x1f   : > { %v126_v40 = vsub.f32 %v635_v17, %v503_v11  ;;  %v127_v41 = vsub.f32 %v637_v15, %v495_v9 }
  0x20   : > { %v57_v39 = vadd.f32 %v56_v36, %v55_v35  ;;  %v647_v13 = vsub.f32 %v84_v37, %v499_v10   ;;  %v649_v12 = vsub.f32 %v86_v38, %v491_v8  }
  0x21   : > { %v128_v44 = vmul.f32 %v126_v40, %v126_v40  ;;  %v129_v45 = vmul.f32 %v127_v41, %v127_v41 }
  0x22   : > { %v58_v43 = vmul.f32 %v57_v39, %v575_v5  ;;  %v94_v46 = vsub.f32 %v568_v1, %v647_v13  ;;  %v96_v47 = vsub.f32 %v573_v2, %v649_v12  ;;  %v70_v49 = vsel %vm59_vm0, %v57_v39, 0.0 }
  0x23   : > { %v130_v50 = vadd.f32 %v129_v45, %v128_v44 }
  0x24   : > { %v60_v48 = vsel %vm59_vm0, %v58_v43, 0.0  ;;  %v657_v16 = vmul.f32 %v388_v42, %v94_v46   ;;  %v659_v14 = vmul.f32 %v388_v42, %v96_v47  }
  0x25   : > { %61 = vadd.xlane.f32.xlu0 %v60_v48  ;;  %v131_v56 = vsel %vm59_vm0, %v130_v50, 0.0 }
  0x26   : > { %v98_v51 = vmul.f32 %v657_v16, %v657_v16  ;;  %v99_v52 = vmul.f32 %v659_v14, %v659_v14  ;;  %v143_v53 = vsub.f32 %v657_v16, %v499_v10  ;;  %v144_v54 = vsub.f32 %v659_v14, %v491_v8 }
  0x28   : > { %v100_v55 = vadd.f32 %v99_v52, %v98_v51  ;;  %v145_v58 = vmul.f32 %v143_v53, %v143_v53  ;;  %v146_v59 = vmul.f32 %v144_v54, %v144_v54 }
  0x29   : > { %71 = vadd.xlane.f32.xlu0 %v70_v49 }
  0x2a   : > { %v101_v57 = vmul.f32 %v100_v55, %v575_v5  ;;  %v112_v61 = vsel %vm59_vm0, %v100_v55, 0.0  ;;  %v147_v62 = vadd.f32 %v146_v59, %v145_v58 }
  0x2c   : > { %v102_v60 = vsel %vm59_vm0, %v101_v57, 0.0  ;;  %v148_v63 = vsel %vm59_vm0, %v147_v62, 0.0 }
  0x2d   : > { %132 = vadd.xlane.f32.xlu0 %v131_v56  ;;  %103 = vadd.xlane.f32.xlu1 %v102_v60 }
  0x31   : > { %113 = vadd.xlane.f32.xlu1 %v112_v61 }
  0x35   : > { %149 = vadd.xlane.f32.xlu1 %v148_v63 }
  0xb2   : > { %v62_v0 = vpop.xlane.xlu0 %61 }
  0xb3   : > { %v63_v3 = vrot.slane %v62_v0, 4 }
  0xb5   : > { %v64_v4 = vadd.f32 %v63_v3, %v62_v0 }
  0xb6   : > { %v72_v6 = vpop.xlane.xlu0 %71 }
  0xb7   : > { %v65_v7 = vrot.slane %v64_v4, 2  ;;  %v73_v8 = vrot.slane %v72_v6, 4 }
  0xb9   : > { %v74_v9 = vadd.f32 %v73_v8, %v72_v6  ;;  %v66_v10 = vadd.f32 %v65_v7, %v64_v4 }
  0xba   : > { %v104_v23 = vpop.xlane.xlu1 %103  ;;  %v133_v39 = vpop.xlane.xlu0 %132 }
  0xbb   : > { %v75_v11 = vrot.slane %v74_v9, 2  ;;  %v67_v18 = vrot.slane %v66_v10, 1  ;;  %v105_v25 = vrot.slane %v104_v23, 4  ;;  %v134_v41 = vrot.slane %v133_v39, 4 }
  0xbd   : > { %v68_v19 = vadd.f32 %v67_v18, %v66_v10  ;;  %v76_v20 = vadd.f32 %v75_v11, %v74_v9  ;;  %v106_v27 = vadd.f32 %v105_v25, %v104_v23  ;;  %v135_v43 = vadd.f32 %v134_v41, %v133_v39 }
  0xbe   : > { %v114_v24 = vpop.xlane.xlu1 %113 }
  0xbf   : > { %217 = vpush %v68_v19  ;;  %v77_v21 = vrot.slane %v76_v20, 1  ;;  %v115_v26 = vrot.slane %v114_v24, 4  ;;  %v107_v29 = vrot.slane %v106_v27, 2  ;;  %v136_v45 = vrot.slane %v135_v43, 2 }
  0xc1   : > { %v78_v22 = vadd.f32 %v77_v21, %v76_v20  ;;  %v116_v28 = vadd.f32 %v115_v26, %v114_v24  ;;  %v108_v32 = vadd.f32 %v107_v29, %v106_v27  ;;  %v137_v48 = vadd.f32 %v136_v45, %v135_v43 }
  0xc2   : > { %v150_v40 = vpop.xlane.xlu1 %149 }
  0xc3   : > { %219 = vpush %v78_v22  ;;  %v117_v30 = vrot.slane %v116_v28, 2  ;;  %v109_v34 = vrot.slane %v108_v32, 1  ;;  %v151_v42 = vrot.slane %v150_v40, 4  ;;  %v138_v50 = vrot.slane %v137_v48, 1 }
  0xc5   : > { %v118_v33 = vadd.f32 %v117_v30, %v116_v28  ;;  %v110_v37 = vadd.f32 %v109_v34, %v108_v32  ;;  %v152_v44 = vadd.f32 %v151_v42, %v150_v40  ;;  %v139_v53 = vadd.f32 %v138_v50, %v137_v48 }
  0xc7   : > { %v119_v35 = vrot.slane %v118_v33, 1  ;;  %v153_v46 = vrot.slane %v152_v44, 2 }
  0xc9   : > { %v120_v38 = vadd.f32 %v119_v35, %v118_v33  ;;  %v154_v49 = vadd.f32 %v153_v46, %v152_v44 }
  0xcb   : > { %v155_v51 = vrot.slane %v154_v49, 1 }
  0xcd   : > { %v156_v54 = vadd.f32 %v155_v51, %v154_v49 }
  0xf0   : > { %s673_s20 = spop %217 }
  0xf4   : > { %s220_s21 = spop %219 }
  0xf5   : > { %v80_v31 = vstv %s220_s21 }
  0xf6   : > { %389 = vrcp.f32 %v80_v31 }
 0x100   : > { %v390_v36 = vpop.eup %389 }
 0x101   : > { %221 = vpush %v390_v36 }
 0x102   : > { %223 = vpush %v110_v37 }
 0x103   : > { %225 = vpush %v120_v38 }
 0x132   : > { %s675_s22 = spop %221 }
 0x133   : > { %s83_s23 = smul.f32 %s675_s22, %s673_s20   ;;  %s679_s24 = spop %223 }
 0x134   : > { %s226_s25 = spop %225 }
 0x135   : > { %v122_v47 = vstv %s226_s25  ;;  %s761_s20 = smov %s83_s23 }
 0x136   : > { %391 = vrcp.f32 %v122_v47 }
 0x140   : > { %v392_v52 = vpop.eup %391 }
 0x141   : > { %227 = vpush %v392_v52 }
 0x142   : > { %229 = vpush %v139_v53 }
 0x143   : > { %231 = vpush %v156_v54 }
 0x172   : > { %s228_s26 = spop %227 }
 0x173   : > { %s125_s19 = smul.f32 %s228_s26, %s679_s24   ;;  %s230_s27 = spop %229 }
 0x174   : > { %s141_s28 = smul.f32 0.03125, %s230_s27  ;;  %s232_s29 = spop %231 }
 0x175   : > { %s158_s30 = smul.f32 0.03125, %s232_s29 }
 0x176   : > { %s142_s4 = sadd.f32 2.220446e-16, %s141_s28 }
 0x178   : > { %s159_s5 = sadd.f32 %s158_s30, %s142_s4 }
 0x17a   : > { %s160_s6 = sand.u32 2147483647, %s159_s5 }
 0x17b   : > { %p161_p1 = scmp.le.f32.partialorder %s160_s6, 5e-05 }
 0x17d   : > { %s162_s7 = scalar_select %p161_p1, 1, 0 }
 0x17f   : > { %p163_p2 = scmp.gt.s32.totalorder %s471_s16, %s162_s7 }
 0x181   : > { %s772_s16 = smov (!%p163_p2, %s471_s16), %s162_s7 }
 0x182   : > { %s760_s1 = smov %s772_s16 }
 0x183 PF: > { %s24_s0 = sadd.s32 1, %s507_s0   ;;  %s762_s16 = smov %s511_s1  ;;  %v765_v6 = vmov %v523_v12  ;;  %v766_v7 = vmov %v527_v13  ;;  %v767_v8 = vmov %v531_v14  ;;  %v768_v9 = vmov %v535_v15  ;;  %v543_v17 = vphi %v759_v17, %v635_v17   ;;  %v539_v16 = vphi %v758_v16, %v657_v16   ;;  %v535_v15 = vphi %v757_v15, %v637_v15   ;;  %v531_v14 = vphi %v756_v14, %v659_v14   ;;  %v527_v13 = vphi %v755_v13, %v647_v13   ;;  %v523_v12 = vphi %v754_v12, %v649_v12   ;;  %s519_s20 = sphi %s753_s20, %s761_s20   ;;  %s515_s19 = sphi %s752_s19, %s125_s19   ;;  %s511_s1 = sphi %s751_s1, %s760_s1  }
 0x184   : > { %p21_p3 = scmp.ge.s32.totalorder %s24_s0, 4   ;;  %s763_s17 = smov %s515_s19  ;;  %v769_v10 = vmov %v539_v16  ;;  %v770_v11 = vmov %v543_v17 }
 0x185   : > { %s764_s18 = smov %s519_s20  ;;  %vm174_vm1 = vcmask (%p21_p3), 125952  }
 0x186   :  { %23 = sbr.rel (!%p21_p3) target bundleno = 7 (0x7), region = 51  ;;  %175 = vst.msk [vmem:[%s749_s2] sm:$0xf] (%p21_p3), %vm174_vm1, %v543_v17  ;;  %176 = vst.msk [vmem:[%s750_s3] sm:$0xf] (%p21_p3), %vm174_vm1, %v535_v15 }

</bundles_post_ra>
